<compile_context>
chip_gen: v7x
topology: tpu7x:2x2x1
jax: 0.10.0
libtpu: 0.0.40
codegen_flags: <defaults>
</compile_context>

<pallas_src>
import jax
import jax.numpy as jnp
from jax.experimental import pallas as pl
from jax.experimental.pallas import tpu as pltpu

_LANES = 128
_MAX_TILE_ROWS = 2048   # 2048 * 128 * 4 B = 1 MiB per input plane per buffer
_MIN_GOOD_TILE = 256    # divisor-tiles below this fall off the DMA sweet spot


def _make_sums_kernel(use_squared):
    """Kernel specialized on the static loss type.

    out_ref rows: 0: sum(metric)  1: sum(seg)  2: sum(metric * seg)
    where metric = (img - pred)^2 for 'l2', |img - pred| for 'l1'.
    Every (row_tile, batch) grid point owns its own (3, 128) output block, so
    there is no resident accumulator, no init phase, and both grid axes are
    independent ("parallel", "parallel").
    """
    def kernel(pred_ref, img_ref, seg_ref, out_ref):
        pred = pred_ref[...].astype(jnp.float32)   # (T, 128)
        img = img_ref[...].astype(jnp.float32)     # (T, 128)
        seg = seg_ref[...].astype(jnp.float32)     # (T, 128)
        d = img - pred
        m = d * d if use_squared else jnp.abs(d)
        # Direct per-row stores (sublane reductions only); cross-lane reduce is
        # cheap JAX glue outside the kernel.
        out_ref[0:1, :] = jnp.sum(m, axis=0, keepdims=True)
        out_ref[1:2, :] = jnp.sum(seg, axis=0, keepdims=True)
        out_ref[2:3, :] = jnp.sum(m * seg, axis=0, keepdims=True)
    return kernel


def _pick_tile(rows):
    """Return (tile_rows, padded_rows) with tile_rows <= _MAX_TILE_ROWS always.

    Never falls back to one giant full-extent block (which could exceed scoped
    VMEM on v5e/v6e or v7x's 64 MiB physical VMEM for large awkward `rows`)."""
    if rows <= _MAX_TILE_ROWS:
        return rows, rows                      # full extent: always layout-legal
    t = _MAX_TILE_ROWS                         # multiple of 8
    while t >= _MIN_GOOD_TILE:
        if rows % t == 0:
            return t, rows
        t -= 8
    tile = _MAX_TILE_ROWS                      # pad rows (zeros, loss-neutral)
    padded = ((rows + tile - 1) // tile) * tile
    return tile, padded


def _prepare_inputs(pred, target):
    """Present inputs lane-dense (B, rows, 128); zero-copy when possible."""
    B, C, H, W = target.shape
    HW = H * W
    rows = -(-HW // _LANES)
    tile_rows, padded_rows = _pick_tile(rows)

    if HW % _LANES == 0 and padded_rows == rows:
        # Free reshapes; target channels 0/3 selected by channel-pinned
        # BlockSpecs so channels 1-2 are never read from HBM.
        pred_r = pred.reshape(B, rows, _LANES)
        tgt_r = target.reshape(B, C, rows, _LANES)
        return "view", (pred_r, tgt_r), tile_rows, rows

    # Padded fallback: three separate zero-padded planes (no jnp.stack rewrite
    # of two planes through HBM).  Padding is loss-neutral (diff and seg are 0);
    # the not_seg pixel count uses the true B*H*W in the wrapper.
    # TODO(synk): replace with an in-kernel ragged-tail mask (broadcasted_iota
    # against the true H*W) to avoid these HBM pre-copies entirely.
    pad = padded_rows * _LANES - HW

    def _plane(x2d):
        return jnp.pad(x2d, ((0, 0), (0, pad))).reshape(B, padded_rows, _LANES)

    pred_p = _plane(pred.reshape(B, HW))
    img_p = _plane(target[:, 0].reshape(B, HW))
    seg_p = _plane(target[:, 3].reshape(B, HW))
    return "planes", (pred_p, img_p, seg_p), tile_rows, padded_rows


def _netloss_partial_sums(use_squared, mode, arrays, tile_rows, rows):
    num_tiles = rows // tile_rows

    if mode == "view":
        pred_r, tgt_r = arrays
        B = pred_r.shape[0]
        in_arrays = (pred_r, tgt_r, tgt_r)   # same target array, two channel views
        in_specs = [
            pl.BlockSpec((pl.Squeezed(), tile_rows, _LANES),
                         lambda p, b: (b, p, 0)),
            pl.BlockSpec((pl.Squeezed(), pl.Squeezed(), tile_rows, _LANES),
                         lambda p, b: (b, 0, p, 0)),      # ch0 = target image
            pl.BlockSpec((pl.Squeezed(), pl.Squeezed(), tile_rows, _LANES),
                         lambda p, b: (b, 3, p, 0)),      # ch3 = seg mask
        ]
    else:
        pred_p, img_p, seg_p = arrays
        B = pred_p.shape[0]
        in_arrays = (pred_p, img_p, seg_p)
        in_specs = [
            pl.BlockSpec((pl.Squeezed(), tile_rows, _LANES),
                         lambda p, b: (b, p, 0))
            for _ in range(3)
        ]

    out_spec = pl.BlockSpec(
        (pl.Squeezed(), pl.Squeezed(), 3, _LANES),
        lambda p, b: (p, b, 0, 0))

    elems = B * rows * _LANES
    cost = pl.CostEstimate(
        flops=6 * elems,
        transcendentals=0,
        bytes_accessed=3 * elems * 4 + num_tiles * B * 3 * _LANES * 4)

    return pl.pallas_call(
        _make_sums_kernel(use_squared),
        out_shape=jax.ShapeDtypeStruct((num_tiles, B, 3, _LANES), jnp.float32),
        grid_spec=pltpu.PrefetchScalarGridSpec(
            num_scalar_prefetch=0,
            grid=(num_tiles, B),
            in_specs=in_specs,
            out_specs=out_spec,
        ),
        compiler_params=pltpu.CompilerParams(
            # Every (row_tile, batch) grid point writes its own output block,
            # so both axes are independent -> shardable across v7x's 2 TCs
            # even when num_tiles == 1.
            dimension_semantics=("parallel", "parallel")),
        cost_estimate=cost,
    )(*in_arrays)


def net_loss(pred, target, reduction=0, loss_options=('l2', 'NRMSE', 0.0, 1.0)):
    """JAX/Pallas equivalent of NetLoss.forward (reduction arg unused upstream)."""
    if loss_options[1] != 'NRMSE':
        raise ValueError('error, selection loss metric')
    if loss_options[0] not in ('l1', 'l2'):
        raise ValueError('error, unknown loss type')
    use_squared = (loss_options[0] == 'l2')

    B, C, H, W = target.shape
    assert C == 4 and pred.shape == (B, H, W)

    mode, arrays, tile_rows, rows = _prepare_inputs(pred, target)
    partials = _netloss_partial_sums(use_squared, mode, arrays, tile_rows, rows)
    sums = jnp.sum(partials, axis=(0, 1, 3))              # (3,)
    sum_m, seg_n, sum_m_seg = sums[0], sums[1], sums[2]

    n_total = jnp.float32(B * H * W)                       # true pixel count
    not_seg_n = n_total - seg_n                            # sum(1 - seg)
    m_not_seg = (sum_m - sum_m_seg) / not_seg_n            # sum(metric*(1-seg))/...

    # Data-dependent `if seg_num_pixels > 0` from the PyTorch module becomes a
    # jnp.where so the whole loss stays traceable.
    safe_seg = jnp.where(seg_n > 0, seg_n, 1.0)
    m_seg = jnp.where(seg_n > 0, sum_m_seg / safe_seg, 0.0)

    w_seg = jnp.float32(loss_options[2])
    w_not_seg = jnp.float32(loss_options[3])
    return m_seg * w_seg + m_not_seg * w_not_seg


def _net_loss_ref(pred, target, loss_options=('l2', 'NRMSE', 0.0, 1.0)):
    """Pure-JAX reference mirroring the PyTorch forward."""
    tgt_img = target[:, 0, :, :]
    seg = target[:, 3, :, :]
    not_seg = 1.0 - seg
    abs_diff = jnp.abs(tgt_img - pred)
    l1_ns = jnp.sum(abs_diff * not_seg) / jnp.sum(not_seg)
    l2_ns = jnp.sum(jnp.square(abs_diff) * not_seg) / jnp.sum(not_seg)
    seg_n = jnp.sum(seg)
    safe = jnp.where(seg_n > 0, seg_n, 1.0)
    l1_s = jnp.where(seg_n > 0, jnp.sum(abs_diff * seg) / safe, 0.0)
    l2_s = jnp.where(seg_n > 0, jnp.sum(jnp.square(abs_diff) * seg) / safe, 0.0)
    w_seg, w_not_seg = loss_options[2], loss_options[3]
    if loss_options[0] == 'l1':
        return l1_s * w_seg + l1_ns * w_not_seg
    return l2_s * w_seg + l2_ns * w_not_seg


if __name__ == "__main__":
    key = jax.random.PRNGKey(0)
    k1, k2, k3 = jax.random.split(key, 3)

    # Lane-aligned path (H*W multiple of 128): zero-copy channel views.
    B, C, H, W = 2, 4, 16, 16
    pred = jax.random.normal(k1, (B, H, W), dtype=jnp.float32)
    target_img = jax.random.normal(k2, (B, H, W), dtype=jnp.float32)
    seg = (jax.random.uniform(k3, (B, H, W)) > 0.5).astype(jnp.float32)
    target = jnp.stack(
        [target_img, jnp.zeros_like(target_img), jnp.zeros_like(target_img), seg],
        axis=1)  # (B, 4, H, W)

    opts = ('l2', 'NRMSE', 0.0, 1.0)  # default loss_options from the module
    loss = jax.block_until_ready(net_loss(pred, target, 0, opts))
    ref = jax.block_until_ready(_net_loss_ref(pred, target, opts))
    assert jnp.allclose(loss, ref, rtol=1e-5, atol=1e-5), (loss, ref)

    # l1 / mixed-weight branch (separately specialized kernel).
    opts_l1 = ('l1', 'NRMSE', 0.5, 0.5)
    loss_l1 = jax.block_until_ready(net_loss(pred, target, 0, opts_l1))
    ref_l1 = jax.block_until_ready(_net_loss_ref(pred, target, opts_l1))
    assert jnp.allclose(loss_l1, ref_l1, rtol=1e-5, atol=1e-5), (loss_l1, ref_l1)

    # Non-lane-aligned spatial size exercises the padded-plane fallback.
    Hn = Wn = 15
    pred_na = jax.random.normal(k1, (B, Hn, Wn), dtype=jnp.float32)
    img_na = jax.random.normal(k2, (B, Hn, Wn), dtype=jnp.float32)
    seg_na = (jax.random.uniform(k3, (B, Hn, Wn)) > 0.5).astype(jnp.float32)
    target_na = jnp.stack(
        [img_na, jnp.zeros_like(img_na), jnp.zeros_like(img_na), seg_na], axis=1)
    loss_na = jax.block_until_ready(net_loss(pred_na, target_na, 0, opts))
    ref_na = jax.block_until_ready(_net_loss_ref(pred_na, target_na, opts))
    assert jnp.allclose(loss_na, ref_na, rtol=1e-5, atol=1e-5), (loss_na, ref_na)

    print("KERNEL_OK")
</pallas_src>

<mosaic_0001>
module attributes {stable_mosaic.version = 11 : i64} {
  func.func @kernel(%arg0: i32, %arg1: i32, %arg2: memref<1x2x128xf32, #tpu.memory_space<vmem>>, %arg3: memref<1x1x2x128xf32, #tpu.memory_space<vmem>>, %arg4: memref<1x1x2x128xf32, #tpu.memory_space<vmem>>, %arg5: memref<1x1x3x128xf32, #tpu.memory_space<vmem>>) attributes {dimension_semantics = [#tpu.dimension_semantics<parallel>, #tpu.dimension_semantics<parallel>], iteration_bounds = array<i64: 1, 2>, scalar_prefetch = 0 : i64, scratch_operands = 0 : i64, tpu.core_type = #tpu.core_type<tc>, window_params = [{transform_indices = @transform_0, window_bounds = array<i64: 1, 2, 128>}, {transform_indices = @transform_1, window_bounds = array<i64: 1, 1, 2, 128>}, {transform_indices = @transform_2, window_bounds = array<i64: 1, 1, 2, 128>}, {transform_indices = @transform_3, window_bounds = array<i64: 1, 1, 3, 128>}]} {
    %c0 = arith.constant 0 : index
    %c0_0 = arith.constant 0 : index
    %c0_1 = arith.constant 0 : index
    %0 = vector.load %arg2[%c0, %c0_0, %c0_1] : memref<1x2x128xf32, #tpu.memory_space<vmem>>, vector<1x2x128xf32>
    %1 = vector.shape_cast %0 : vector<1x2x128xf32> to vector<2x128xf32>
    %c0_2 = arith.constant 0 : index
    %c0_3 = arith.constant 0 : index
    %c0_4 = arith.constant 0 : index
    %c0_5 = arith.constant 0 : index
    %2 = vector.load %arg3[%c0_2, %c0_3, %c0_4, %c0_5] : memref<1x1x2x128xf32, #tpu.memory_space<vmem>>, vector<1x1x2x128xf32>
    %3 = vector.shape_cast %2 : vector<1x1x2x128xf32> to vector<2x128xf32>
    %c0_6 = arith.constant 0 : index
    %c0_7 = arith.constant 0 : index
    %c0_8 = arith.constant 0 : index
    %c0_9 = arith.constant 0 : index
    %4 = vector.load %arg4[%c0_6, %c0_7, %c0_8, %c0_9] : memref<1x1x2x128xf32, #tpu.memory_space<vmem>>, vector<1x1x2x128xf32>
    %5 = vector.shape_cast %4 : vector<1x1x2x128xf32> to vector<2x128xf32>
    %6 = arith.subf %3, %1 : vector<2x128xf32>
    %7 = arith.mulf %6, %6 : vector<2x128xf32>
    %cst = arith.constant dense<0.000000e+00> : vector<128xf32>
    %8 = vector.multi_reduction <add>, %7, %cst [0] : vector<2x128xf32> to vector<128xf32>
    %9 = vector.shape_cast %8 : vector<128xf32> to vector<1x128xf32>
    %c0_10 = arith.constant 0 : index
    %c0_11 = arith.constant 0 : index
    %c0_12 = arith.constant 0 : index
    %c0_13 = arith.constant 0 : index
    %10 = vector.load %arg5[%c0_10, %c0_11, %c0_12, %c0_13] : memref<1x1x3x128xf32, #tpu.memory_space<vmem>>, vector<1x1x1x128xf32>
    %11 = vector.shape_cast %10 : vector<1x1x1x128xf32> to vector<1x128xf32>
    %12 = vector.shape_cast %9 : vector<1x128xf32> to vector<1x1x1x128xf32>
    tpu.vector_store %arg5[%c0_10, %c0_11, %c0_12, %c0_13], %12 {strides = array<i32>} : memref<1x1x3x128xf32, #tpu.memory_space<vmem>>, vector<1x1x1x128xf32>,
    %cst_14 = arith.constant dense<0.000000e+00> : vector<128xf32>
    %13 = vector.multi_reduction <add>, %5, %cst_14 [0] : vector<2x128xf32> to vector<128xf32>
    %14 = vector.shape_cast %13 : vector<128xf32> to vector<1x128xf32>
    %c0_15 = arith.constant 0 : index
    %c0_16 = arith.constant 0 : index
    %c1 = arith.constant 1 : index
    %c0_17 = arith.constant 0 : index
    %15 = vector.load %arg5[%c0_15, %c0_16, %c1, %c0_17] : memref<1x1x3x128xf32, #tpu.memory_space<vmem>>, vector<1x1x1x128xf32>
    %16 = vector.shape_cast %15 : vector<1x1x1x128xf32> to vector<1x128xf32>
    %17 = vector.shape_cast %14 : vector<1x128xf32> to vector<1x1x1x128xf32>
    tpu.vector_store %arg5[%c0_15, %c0_16, %c1, %c0_17], %17 {strides = array<i32>} : memref<1x1x3x128xf32, #tpu.memory_space<vmem>>, vector<1x1x1x128xf32>,
    %18 = arith.mulf %7, %5 : vector<2x128xf32>
    %cst_18 = arith.constant dense<0.000000e+00> : vector<128xf32>
    %19 = vector.multi_reduction <add>, %18, %cst_18 [0] : vector<2x128xf32> to vector<128xf32>
    %20 = vector.shape_cast %19 : vector<128xf32> to vector<1x128xf32>
    %c0_19 = arith.constant 0 : index
    %c0_20 = arith.constant 0 : index
    %c2 = arith.constant 2 : index
    %c0_21 = arith.constant 0 : index
    %21 = vector.load %arg5[%c0_19, %c0_20, %c2, %c0_21] : memref<1x1x3x128xf32, #tpu.memory_space<vmem>>, vector<1x1x1x128xf32>
    %22 = vector.shape_cast %21 : vector<1x1x1x128xf32> to vector<1x128xf32>
    %23 = vector.shape_cast %20 : vector<1x128xf32> to vector<1x1x1x128xf32>
    tpu.vector_store %arg5[%c0_19, %c0_20, %c2, %c0_21], %23 {strides = array<i32>} : memref<1x1x3x128xf32, #tpu.memory_space<vmem>>, vector<1x1x1x128xf32>,
    return
  }
  func.func @transform_0(%arg0: i32, %arg1: i32) -> (i32, i32, i32) {
    %c0_i32 = arith.constant 0 : i32
    %c0_i32_0 = arith.constant 0 : i32
    return %arg1, %arg0, %c0_i32 : i32, i32, i32
  }
  func.func @transform_1(%arg0: i32, %arg1: i32) -> (i32, i32, i32, i32) {
    %c0_i32 = arith.constant 0 : i32
    %c0_i32_0 = arith.constant 0 : i32
    %c0_i32_1 = arith.constant 0 : i32
    return %arg1, %c0_i32, %arg0, %c0_i32_0 : i32, i32, i32, i32
  }
  func.func @transform_2(%arg0: i32, %arg1: i32) -> (i32, i32, i32, i32) {
    %c3_i32 = arith.constant 3 : i32
    %c0_i32 = arith.constant 0 : i32
    %c0_i32_0 = arith.constant 0 : i32
    return %arg1, %c3_i32, %arg0, %c0_i32 : i32, i32, i32, i32
  }
  func.func @transform_3(%arg0: i32, %arg1: i32) -> (i32, i32, i32, i32) {
    %c0_i32 = arith.constant 0 : i32
    %c0_i32_0 = arith.constant 0 : i32
    %c0_i32_1 = arith.constant 0 : i32
    return %arg0, %arg1, %c0_i32, %c0_i32_0 : i32, i32, i32, i32
  }
}

</mosaic_0001>

<bundles_post_ra>
// kernel: tpu_custom_call.1
= control target key start
LH: loop header
LB: loop body
LE: loop exit
PB: predicated region body
PF: predicated region fallthrough
CT: control target
= control target key end

     0   :  { %8 = vsyncpa [#allocation3], 0  ;;  %s912_s0 = inlined_call_operand.hbm [shape: f32[2,2,128], index: 0, kind: input, shape index: {}]   ;;  %s913_s1 = inlined_call_operand.hbm [shape: f32[2,4,2,128], index: 1, kind: input, shape index: {}]   ;;  %s914_s2 = inlined_call_operand.hbm [shape: f32[2,4,2,128], index: 2, kind: input, shape index: {}]   ;;  %s915_s3 = inlined_call_operand.vmem [shape: f32[1,2,3,128], index: 3, kind: output, shape index: {}]  }
   0x1   :  { %10 = vsyncpa [#allocation3 + $0x1], 0 }
   0x2   :  { %11 = vsyncpa [#allocation5], 0 }
   0x3   :  { %13 = vsyncpa [#allocation5 + $0x1], 0  ;;  %s716_s12 = smov 0   ;;  %s718_s13 = smov 0  }
   0x4   :  { %s720_s14 = smov 0   ;;  %s722_s15 = smov 0  }
   0x5   :  { %s724_s16 = smov 0   ;;  %s726_s17 = smov 0  }
   0x6 LB: > { %s460_s18 = sadd.s32 4294967295, %s691_s17   ;;  %s28_s19 = sadd.s32 1, %s687_s16  ;;  %s691_s17 = sphi %s726_s17, %s19_s17   ;;  %s687_s16 = sphi %s724_s16, %s931_s16   ;;  %s683_s15 = sphi %s722_s15, %s930_s15   ;;  %s679_s14 = sphi %s720_s14, %s929_s14   ;;  %s675_s13 = sphi %s718_s13, %s928_s13   ;;  %s671_s12 = sphi %s716_s12, %s927_s12  }
   0x7   : > { %p29_p0 = scmp.ge.s32.totalorder %s28_s19, 2  ;;  %s40_s20 = sadd.s32 1, %s679_s14 }
   0x8   : > { %p47_p1 = scmp.ne.s32.totalorder %s679_s14, %s675_s13  ;;  %p48_p2 = scmp.eq.s32.totalorder %s691_s17, 0 }
   0x9   : > { %s933_s19 = smov (%p29_p0, %s28_s19), 0  ;;  %p53_p4 = scmp.ne.s32.totalorder %s675_s13, %s671_s12 }
   0xa   : > { %p49_p3 = por %p48_p2, %p47_p1  ;;  %s35_s21 = ssub.s32 %s687_s16, %s933_s19 }
   0xb   : > { %p54_p5 = scmp.eq.s32.totalorder %s460_s18, 0  ;;  %p38_p6 = scmp.eq.s32.totalorder %s35_s21, 0 }
   0xc   : > { %p497_p8 = scmp.lt.s32.totalorder %s691_s17, 2  ;;  %s161_s24 = sand.u32 1, %s679_s14  }
   0xd   : > { %p757_p7 = por %p54_p5, %p53_p4  ;;  %s772_s26 = sshll.u32 %s161_s24, 1 }
   0xe   : > { %s763_s23 = scalar_select %p38_p6, %s679_s14, %s40_s20  }
   0xf   : > { %s919_s22 = scalar_select %p757_p7, 1, 0 }
  0x10   : > { %p766_p9 = pnand %p497_p8, %p49_p3  ;;  %s180_s27 = sand.u32 1, %s691_s17  }
  0x11   : > { %s479_s28 = sshll.u32 %s687_s16, 7  ;;  %s184_s5 = scalar_lea.vmem [#allocation4], %s772_s26 }
  0x12   : > { %s920_s25 = scalar_select %p766_p9, 1, 0 }
  0x13   : > { %s779_s4 = scalar_lea.hbm %s913_s1, %s479_s28  ;;  %s193_s6 = sshll.u32 %s184_s5, 4  ;;  %s782_s6 = int_to_ptr.vmem [resolvable:$true] %s193_s6 }
  0x14   : > { %s787_s9 = scalar_lea.hbm %s914_s2, %s479_s28  ;;  %s789_s10 = scalar_lea.sflag [#allocation5], %s180_s27 }
  0x15   : > { %s546_s11 = scalar_lea.hbm %s779_s4, 32  ;;  %p795_p11 = pneg %p766_p9 }
  0x16   : > { %p547_p10 = scmp.ne.s32.totalorder %s779_s4, %s546_s11  ;;  %s551_s29 = scalar_lea.hbm %s913_s1, 256 }
  0x17   : > { %p552_p0 = scmp.lt.u32.totalorder %s779_s4, %s913_s1  ;;  %p553_p1 = scmp.lt.u32.totalorder %s551_s29, %s546_s11 }
  0x18   : > { %p549_p12 = pnand %p795_p11, %p547_p10  ;;  %p555_p3 = scmp.lt.u32.totalorder %s546_s11, %s779_s4 }
  0x19   : > { %p554_p2 = por %p553_p1, %p552_p0 }
  0x1a   : > { %p550_p13 = pneg %p549_p12 }
  0x1b   : > { %p556_p4 = por %p555_p3, %p554_p2 }
  0x1d   : > { %p557_p5 = pnand %p556_p4, %p550_p13 }
  0x1f   : > { %560 = shalt.err (!%p557_p5)
}
  0x20   : > { %s561_s27 = scalar_lea.vmem %s782_s6, 32  ;;  %s693_s5 = smov [#allocation4]  }
  0x21   : > { %p562_p6 = scmp.ne.s32.totalorder %s782_s6, %s561_s27  ;;  %s566_s7 = sshll.u32 %s693_s5, 4  ;;  %s567_s7 = int_to_ptr.vmem [resolvable:$false] %s566_s7 }
  0x22   : > { %s568_s8 = scalar_lea.vmem %s567_s7, 64  ;;  %p569_p12 = scmp.lt.s32.totalorder %s782_s6, %s567_s7 }
  0x23   : > { %p564_p8 = pnand %p562_p6, %p795_p11  ;;  %p570_p7 = scmp.lt.s32.totalorder %s568_s8, %s561_s27 }
  0x25   : > { %p565_p10 = pneg %p564_p8  ;;  %p571_p0 = por %p570_p7, %p569_p12 }
  0x27   : > { %p572_p1 = pnand %p571_p0, %p565_p10 }
  0x29   : > { %575 = shalt.err (!%p572_p1)
}
  0x2a   : > { %493 = dma.hbm_to_vmem [thread:$0]  (!%p766_p9), %s779_s4, 32, %s782_s6, %s789_s10  }
  0x2b   : > { %p472_p13 = scmp.ge.s32.totalorder %s691_s17, 1  ;;  %p219_p2 = scmp.lt.s32.totalorder %s691_s17, 3 }
  0x2c   : > { %s465_s20 = sshll.u32 %s687_s16, 5  ;;  %s165_s28 = scalar_lea.vmem [#allocation2], %s772_s26 }
  0x2d   : > { %p821_p3 = pnand %p472_p13, %p219_p2  ;;  %s829_s30 = scalar_lea.hbm %s912_s0, %s465_s20 }
  0x2e   : > { %s173_s27 = sshll.u32 %s165_s28, 4  ;;  %s162_s4 = scalar_lea.sflag [#allocation3], %s161_s24  ;;  %s174_s27 = int_to_ptr.vmem [resolvable:$true] %s173_s27 }
  0x2f   : > { %s922_s11 = scalar_select %p821_p3, 1, 0 }
  0x30   : > { %s576_s6 = scalar_lea.hbm %s829_s30, 32  ;;  %s581_s8 = scalar_lea.hbm %s912_s0, 64 }
  0x31   : > { %p577_p7 = scmp.ne.s32.totalorder %s829_s30, %s576_s6  ;;  %p582_p6 = scmp.lt.u32.totalorder %s829_s30, %s912_s0 }
  0x32   : > { %p583_p8 = scmp.lt.u32.totalorder %s581_s8, %s576_s6  ;;  %p585_p12 = scmp.lt.u32.totalorder %s576_s6, %s829_s30 }
  0x33   : > { %p579_p4 = pnand %p577_p7, %p795_p11 }
  0x34   : > { %p584_p10 = por %p583_p8, %p582_p6 }
  0x35   : > { %p580_p5 = pneg %p579_p4 }
  0x36   : > { %p586_p0 = por %p585_p12, %p584_p10 }
  0x38   : > { %p587_p1 = pnand %p586_p0, %p580_p5 }
  0x3a   : > { %590 = shalt.err (!%p587_p1)
}
  0x3b   : > { %s591_s24 = scalar_lea.vmem %s174_s27, 32  ;;  %s694_s29 = smov [#allocation2]  }
  0x3c   : > { %p592_p13 = scmp.ne.s32.totalorder %s174_s27, %s591_s24  ;;  %s596_s28 = sshll.u32 %s694_s29, 4  ;;  %s597_s28 = int_to_ptr.vmem [resolvable:$false] %s596_s28 }
  0x3d   : > { %s598_s5 = scalar_lea.vmem %s597_s28, 64  ;;  %p599_p4 = scmp.lt.s32.totalorder %s174_s27, %s597_s28 }
  0x3e   : > { %p594_p2 = pnand %p592_p13, %p795_p11  ;;  %p600_p3 = scmp.lt.s32.totalorder %s598_s5, %s591_s24 }
  0x40   : > { %p595_p7 = pneg %p594_p2  ;;  %p601_p9 = por %p600_p3, %p599_p4 }
  0x42   : > { %p602_p6 = pnand %p601_p9, %p595_p7 }
  0x44   : > { %605 = shalt.err (!%p602_p6)
}
  0x45   : > { %p923_p8 = scmp.ne.s32.totalorder %s920_s25, 0  ;;  %s852_s6 = scalar_lea.hbm %s787_s9, 96 }
  0x46   : > { %s204_s7 = scalar_lea.vmem [#allocation6], %s772_s26  ;;  %s636_s20 = scalar_lea.hbm %s787_s9, 128 }
  0x47   : > { %490 = dma.hbm_to_vmem [thread:$0]  (!%p923_p8), %s829_s30, 32, %s174_s27, %s162_s4  }
  0x48   : > { %s214_s8 = sshll.u32 %s204_s7, 4  ;;  %p607_p3 = scmp.ne.s32.totalorder %s852_s6, %s636_s20  ;;  %s215_s8 = int_to_ptr.vmem [resolvable:$true] %s214_s8 }
  0x49   : > { %s611_s29 = scalar_lea.hbm %s914_s2, 256  ;;  %p612_p10 = scmp.lt.u32.totalorder %s852_s6, %s914_s2 }
  0x4a   : > { %p609_p9 = pnand %p607_p3, %p795_p11  ;;  %p613_p12 = scmp.lt.u32.totalorder %s611_s29, %s636_s20 }
  0x4b   : > { %p615_p1 = scmp.lt.u32.totalorder %s636_s20, %s852_s6 }
  0x4c   : > { %p610_p5 = pneg %p609_p9  ;;  %p614_p0 = por %p613_p12, %p612_p10 }
  0x4e   : > { %p616_p13 = por %p615_p1, %p614_p0 }
  0x50   : > { %p617_p2 = pnand %p616_p13, %p610_p5 }
  0x52   : > { %620 = shalt.err (!%p617_p2)
}
  0x53   : > { %s621_s26 = scalar_lea.vmem %s215_s8, 32  ;;  %s695_s9 = smov [#allocation6]  }
  0x54   : > { %p622_p7 = scmp.ne.s32.totalorder %s215_s8, %s621_s26  ;;  %s626_s30 = sshll.u32 %s695_s9, 4  ;;  %s627_s30 = int_to_ptr.vmem [resolvable:$false] %s626_s30 }
  0x55   : > { %s628_s27 = scalar_lea.vmem %s627_s30, 64  ;;  %p629_p3 = scmp.lt.s32.totalorder %s215_s8, %s627_s30 }
  0x56   : > { %p624_p4 = pnand %p622_p7, %p795_p11  ;;  %p630_p9 = scmp.lt.s32.totalorder %s628_s27, %s621_s26 }
  0x58   : > { %p625_p6 = pneg %p624_p4  ;;  %p631_p8 = por %p630_p9, %p629_p3 }
  0x5a   : > { %p632_p10 = pnand %p631_p8, %p625_p6 }
  0x5c   : > { %635 = shalt.err (!%p632_p10)
}
  0x5d   : > { %p924_p12 = scmp.ne.s32.totalorder %s920_s25, 0  ;;  %p925_p5 = scmp.ne.s32.totalorder %s922_s11, 0 }
  0x5e   : > { %s225_s12 = sand.u32 (!%p925_p5), 1, %s675_s13   ;;  %p926_p11 = scmp.ne.s32.totalorder (!%p925_p5), %s919_s22, 0 }
  0x5f   : > { %496 = dma.hbm_to_vmem [thread:$0]  (!%p924_p12), %s852_s6, 32, %s215_s8, %s789_s10  }
  0x60   : > { %223 = sbr.rel (%p925_p5) target bundleno = 129 (0x81), region = 32  ;;  %s473_s4 = sshll.u32 (!%p925_p5), %s225_s12, 1 }
  0x61   : > { %s226_s7 = scalar_lea.sflag (!%p925_p5), [#allocation3], %s225_s12  ;;  %s229_s20 = scalar_lea.vmem (!%p925_p5), [#allocation2], %s473_s4 }
  0x67   : > { %662 = dma.done.wait (%p926_p11), %s226_s7, 32  }
  0x68   : > { %664 = vsyncadd (%p926_p11), %s226_s7, 4294967264  ;;  %s234_s25 = sand.u32 1, %s460_s18   ;;  %s238_s10 = scalar_lea.vmem [#allocation4], %s473_s4 }
  0x69   : > { %s235_s21 = scalar_lea.sflag [#allocation5], %s234_s25 }
  0x6a   : > { %666 = dma.done.wait (%p926_p11), %s235_s21, 64  }
  0x6b   : > { %668 = vsyncadd (%p926_p11), %s235_s21, 4294967232  ;;  %vm296_vm0 = vcmask 1041408   ;;  %p285_p8 = scmp.lt.s32.totalorder %s683_s15, 1  ;;  %v291_v0 = vld [vmem:[%s229_s20] sm:$0x3]  ;;  %s247_s11 = scalar_lea.vmem [#allocation6], %s473_s4 }
  0x6c   : > { %v292_v1 = vld [vmem:[%s238_s10] sm:$0x3]  ;;  %v293_v2 = vld [vmem:[%s247_s11] sm:$0x3] }
  0x6d   : > { %v294_v3 = vsub.f32 %v292_v1, %v291_v0  ;;  %v305_v4 = vsel %vm296_vm0, %v293_v2, 0.0  ;;  %s935_s15 = smov (!%p285_p8, %s683_s15), 1 }
  0x6e   : > { %v306_v5 = vrot.slane %v305_v4, 4  ;;  %s476_s18 = sshll.u32 %s935_s15, 2 }
  0x6f   : > { %v295_v6 = vmul.f32 %v294_v3, %v294_v3  ;;  %s290_s8 = scalar_lea.vmem %s915_s3, %s476_s18 }
  0x70   : > { %v307_v7 = vadd.f32 %v306_v5, %v305_v4 }
  0x71   : > { %v297_v8 = vsel %vm296_vm0, %v295_v6, 0.0  ;;  %v313_v9 = vmul.f32 %v295_v6, %v293_v2 }
  0x72   : > { %v298_v10 = vrot.slane %v297_v8, 4  ;;  %v308_v11 = vrot.slane %v307_v7, 2 }
  0x73   : > { %v314_v12 = vsel %vm296_vm0, %v313_v9, 0.0 }
  0x74   : > { %v299_v13 = vadd.f32 %v298_v10, %v297_v8  ;;  %v309_v14 = vadd.f32 %v308_v11, %v307_v7  ;;  %v315_v15 = vrot.slane %v314_v12, 4 }
  0x76   : > { %v300_v16 = vrot.slane %v299_v13, 2  ;;  %v310_v17 = vrot.slane %v309_v14, 1  ;;  %v316_v18 = vadd.f32 %v315_v15, %v314_v12 }
  0x78   : > { %v301_v19 = vadd.f32 %v300_v16, %v299_v13  ;;  %v311_v20 = vadd.f32 %v310_v17, %v309_v14  ;;  %v317_v21 = vrot.slane %v316_v18, 2 }
  0x7a   : > { %v302_v22 = vrot.slane %v301_v19, 1  ;;  %312 = vst [vmem:[%s290_s8 + $0x1] sm:$0x1] %v311_v20  ;;  %v318_v23 = vadd.f32 %v317_v21, %v316_v18 }
  0x7c   : > { %v303_v24 = vadd.f32 %v302_v22, %v301_v19  ;;  %v319_v25 = vrot.slane %v318_v23, 1 }
  0x7e   : > { %304 = vst [vmem:[%s290_s8] sm:$0x1] %v303_v24  ;;  %v320_v26 = vadd.f32 %v319_v25, %v318_v23 }
  0x80   : > { %321 = vst [vmem:[%s290_s8 + $0x2] sm:$0x1] %v320_v26 }
  0x81 PF: > { %s19_s17 = sadd.s32 1, %s691_s17   ;;  %s927_s12 = smov %s675_s13 }
  0x82   : > { %p16_p0 = scmp.ge.s32.totalorder %s19_s17, 4   ;;  %s928_s13 = smov %s679_s14 }
  0x83   : > { %s929_s14 = smov %s763_s23  ;;  %s930_s15 = smov %s687_s16 }
  0x84   : > { %s931_s16 = smov %s933_s19  ;;  %18 = sbr.rel (!%p16_p0) target bundleno = 6 (0x6), region = 96 }
  0x8b   :  { %349 = vsyncpa [#allocation3], 1 }
  0x8c   :  { %351 = vsyncpa [#allocation3 + $0x1], 1 }
  0x8d   :  { %352 = vsyncpa [#allocation5], 1 }
  0x8e   :  { %354 = vsyncpa [#allocation5 + $0x1], 1 }

</bundles_post_ra>
